<compile_context>
chip_gen: v6e
topology: v6e:2x2x1
jax: 0.10.0
libtpu: 0.0.40
codegen_flags: <defaults>
</compile_context>

<pallas_src>
import jax
import jax.numpy as jnp
from jax.experimental import pallas as pl
from jax.experimental.pallas import tpu as pltpu


def _round_up(x, m):
    return ((x + m - 1) // m) * m


def _projection_kernel(x_ref, w_ref, b_ref, o_ref):
    # x_ref: (tm, E)       tile of flattened hidden states (f32 or bf16)
    # w_ref: (E, L_pad)    full projection weight, MXU-native (in, out) layout
    # b_ref: (1, L_pad)    bias, f32, zero-padded
    # o_ref: (tm, L_pad)   lane-dense f32 output tile
    x = jnp.maximum(x_ref[...], 0.0)                       # nn.ReLU(), stays in input dtype
    y = jnp.dot(x, w_ref[...], preferred_element_type=jnp.float32)
    o_ref[...] = (y + b_ref[...]).astype(o_ref.dtype)


def mld_text_encoder_projection(text_encoded, weight, bias, *, tm=512, use_bf16=False):
    """text_emb = Linear(ReLU(text_encoded)), i.e. the MLDTextEncoder projection head.

    text_encoded: (B, S, E) float32 -- BERT last_hidden_state surrogate
    weight:       (L, E)    float32 -- torch nn.Linear.weight layout (out, in)
    bias:         (L,)      float32
    use_bf16:     cast activations + weight to bf16 in HBM (f32 accumulate)
    returns:      (B, S, L) float32
    """
    B, S, E = text_encoded.shape
    L = weight.shape[0]
    M = B * S

    # Lane-dense output: pad latent dim up to a multiple of 128 lanes.
    L_pad = _round_up(L, 128)

    # Row tile: as large as requested, never larger than the (8-aligned) row
    # count, and capped so the row grid has >= 2 steps when M > 8 (keeps both
    # v7x TensorCores busy under dimension_semantics=("parallel",)).
    tm_eff = min(max(8, _round_up(tm, 8)), _round_up(M, 8))
    tm_eff = min(tm_eff, max(8, _round_up(pl.cdiv(M, 2), 8)))
    grid_m = pl.cdiv(M, tm_eff)          # ragged last block handled by Pallas

    in_dtype = jnp.bfloat16 if use_bf16 else text_encoded.dtype

    # Flatten only -- no wrapper-side row padding (avoids a full HBM copy of
    # the activations); the tail block is masked by Pallas on store.
    x2d = text_encoded.reshape(M, E).astype(in_dtype)

    # One-time weight pad + transpose to MXU-native (E, L_pad).
    w = weight
    b2d = bias.reshape(1, L).astype(jnp.float32)
    if L_pad != L:
        w = jnp.pad(w, ((0, L_pad - L), (0, 0)))
        b2d = jnp.pad(b2d, ((0, 0), (0, L_pad - L)))
    w_t = w.T.astype(in_dtype)           # (E, L_pad)

    # Scoped-VMEM estimate (double-buffered x/out + resident weight/bias).
    isz = jnp.dtype(in_dtype).itemsize
    est = (2 * tm_eff * E * isz          # x tiles (double-buffered)
           + 2 * tm_eff * L_pad * 4      # out tiles (f32, double-buffered)
           + 2 * E * L_pad * isz         # weight (conservatively x2)
           + 2 * L_pad * 4)              # bias
    vmem_limit = int(min(max(2 * est, 32 << 20), 56 << 20))

    out2d = pl.pallas_call(
        _projection_kernel,
        out_shape=jax.ShapeDtypeStruct((M, L_pad), jnp.float32),
        grid_spec=pltpu.PrefetchScalarGridSpec(
            num_scalar_prefetch=0,
            grid=(grid_m,),
            in_specs=[
                pl.BlockSpec((tm_eff, E), lambda i: (i, 0)),   # x tile, rows march
                pl.BlockSpec((E, L_pad), lambda i: (0, 0)),    # full weight, resident
                pl.BlockSpec((1, L_pad), lambda i: (0, 0)),    # bias, resident
            ],
            out_specs=pl.BlockSpec((tm_eff, L_pad), lambda i: (i, 0)),
        ),
        compiler_params=pltpu.CompilerParams(
            dimension_semantics=("parallel",),
            vmem_limit_bytes=vmem_limit),
    )(x2d, w_t, b2d)

    return out2d[:, :L].reshape(B, S, L)


def _reference(text_encoded, weight, bias):
    # Pure-JAX reference of nn.Sequential(nn.ReLU(), nn.Linear(E, L))
    x = jnp.maximum(text_encoded, 0.0)
    return jnp.einsum("bse,le->bsl", x, weight) + bias


if __name__ == "__main__":
    # Small shapes consistent with the module's forward:
    #   batch=2, seq=8 tokens, encoded_dim (BERT hidden) = 64, latent_dim = 32
    B, S, E, L = 2, 8, 64, 32

    key = jax.random.PRNGKey(0)
    k_x, k_w, k_b = jax.random.split(key, 3)

    text_encoded = jax.random.normal(k_x, (B, S, E), dtype=jnp.float32)
    weight = 0.05 * jax.random.normal(k_w, (L, E), dtype=jnp.float32)  # torch (out, in)
    bias = 0.05 * jax.random.normal(k_b, (L,), dtype=jnp.float32)

    ref = _reference(text_encoded, weight, bias)

    # 1) f32 path: exact parity with the PyTorch f32 module.
    text_emb = jax.block_until_ready(
        mld_text_encoder_projection(text_encoded, weight, bias))
    assert text_emb.shape == (B, S, L)
    assert jnp.allclose(text_emb, ref, atol=1e-5, rtol=1e-5), "f32 mismatch vs reference"

    # 2) Non-divisible row-count path (ragged last block, multi-step grid).
    B2, S2 = 3, 11  # M = 33, not a multiple of the row tile
    te2 = jax.random.normal(jax.random.PRNGKey(1), (B2, S2, E), dtype=jnp.float32)
    out2 = jax.block_until_ready(
        mld_text_encoder_projection(te2, weight, bias, tm=16))
    assert out2.shape == (B2, S2, L)
    assert jnp.allclose(out2, _reference(te2, weight, bias), atol=1e-5, rtol=1e-5), \
        "ragged-row mismatch vs reference"

    # 3) bf16 HBM path (halved input/weight bytes, f32 accumulate) -- looser tolerance.
    out_bf16 = jax.block_until_ready(
        mld_text_encoder_projection(text_encoded, weight, bias, use_bf16=True))
    assert out_bf16.shape == (B, S, L)
    assert jnp.allclose(out_bf16, ref, atol=5e-2, rtol=5e-2), "bf16 mismatch vs reference"

    print("KERNEL_OK")
</pallas_src>

<mosaic_0001>
module attributes {stable_mosaic.version = 11 : i64} {
  func.func @_projection_kernel(%arg0: i32, %arg1: memref<8x64xf32, #tpu.memory_space<vmem>>, %arg2: memref<64x128xf32, #tpu.memory_space<vmem>>, %arg3: memref<1x128xf32, #tpu.memory_space<vmem>>, %arg4: memref<8x128xf32, #tpu.memory_space<vmem>>) attributes {dimension_semantics = [#tpu.dimension_semantics<parallel>], iteration_bounds = array<i64: 2>, scalar_prefetch = 0 : i64, scratch_operands = 0 : i64, tpu.core_type = #tpu.core_type<tc>, window_params = [{transform_indices = @transform_0, window_bounds = array<i64: 8, 64>}, {pipeline_mode = #tpu.pipeline_mode<synchronous>, transform_indices = @transform_1, window_bounds = array<i64: 64, 128>}, {pipeline_mode = #tpu.pipeline_mode<synchronous>, transform_indices = @transform_2, window_bounds = array<i64: 1, 128>}, {transform_indices = @transform_3, window_bounds = array<i64: 8, 128>}]} {
    %c0 = arith.constant 0 : index
    %c0_0 = arith.constant 0 : index
    %0 = vector.load %arg1[%c0, %c0_0] : memref<8x64xf32, #tpu.memory_space<vmem>>, vector<8x64xf32>
    %cst = arith.constant 0.000000e+00 : f32
    %1 = vector.broadcast %cst : f32 to vector<8x64xf32>
    %2 = arith.maximumf %0, %1 : vector<8x64xf32>
    %c0_1 = arith.constant 0 : index
    %c0_2 = arith.constant 0 : index
    %3 = vector.load %arg2[%c0_1, %c0_2] : memref<64x128xf32, #tpu.memory_space<vmem>>, vector<64x128xf32>
    %cst_3 = arith.constant dense<0.000000e+00> : vector<8x128xf32>
    %4 = tpu.matmul %2, %3, %cst_3 {dimension_numbers = #tpu.dot_dimension_numbers<[1], [0], [0], [1], [0, 0, 1, 1], [], []>} : vector<8x64xf32>, vector<64x128xf32>, vector<8x128xf32> -> vector<8x128xf32>
    %c0_4 = arith.constant 0 : index
    %c0_5 = arith.constant 0 : index
    %5 = vector.load %arg3[%c0_4, %c0_5] : memref<1x128xf32, #tpu.memory_space<vmem>>, vector<1x128xf32>
    %6 = vector.broadcast %5 : vector<1x128xf32> to vector<8x128xf32>
    %7 = arith.addf %4, %6 : vector<8x128xf32>
    %c0_6 = arith.constant 0 : index
    %c0_7 = arith.constant 0 : index
    %8 = vector.load %arg4[%c0_6, %c0_7] : memref<8x128xf32, #tpu.memory_space<vmem>>, vector<8x128xf32>
    tpu.vector_store %arg4[%c0_6, %c0_7], %7 {strides = array<i32>} : memref<8x128xf32, #tpu.memory_space<vmem>>, vector<8x128xf32>,
    return
  }
  func.func @transform_0(%arg0: i32) -> (i32, i32) {
    %c0_i32 = arith.constant 0 : i32
    %c0_i32_0 = arith.constant 0 : i32
    return %arg0, %c0_i32 : i32, i32
  }
  func.func @transform_1(%arg0: i32) -> (i32, i32) {
    %c0_i32 = arith.constant 0 : i32
    %c0_i32_0 = arith.constant 0 : i32
    %c0_i32_1 = arith.constant 0 : i32
    return %c0_i32, %c0_i32_0 : i32, i32
  }
  func.func @transform_2(%arg0: i32) -> (i32, i32) {
    %c0_i32 = arith.constant 0 : i32
    %c0_i32_0 = arith.constant 0 : i32
    %c0_i32_1 = arith.constant 0 : i32
    return %c0_i32, %c0_i32_0 : i32, i32
  }
  func.func @transform_3(%arg0: i32) -> (i32, i32) {
    %c0_i32 = arith.constant 0 : i32
    %c0_i32_0 = arith.constant 0 : i32
    return %arg0, %c0_i32 : i32, i32
  }
}

</mosaic_0001>

<bundles_post_ra>
// kernel: tpu_custom_call.1
= control target key start
LH: loop header
LB: loop body
LE: loop exit
PB: predicated region body
PF: predicated region fallthrough
CT: control target
= control target key end

     0   :  { %8 = vsyncpa [#allocation3], 0  ;;  %s810_s0 = inlined_call_operand.hbm [shape: f32[16,64], index: 0, kind: input, shape index: {}]   ;;  %s811_s1 = inlined_call_operand.hbm [shape: f32[64,128], index: 1, kind: input, shape index: {}]   ;;  %s812_s2 = inlined_call_operand.vmem [shape: f32[1,128], index: 2, kind: input, shape index: {}]   ;;  %s813_s3 = inlined_call_operand.hbm [shape: f32[16,128], index: 3, kind: output, shape index: {}]  }
   0x1   :  { %10 = vsyncpa [#allocation3 + $0x1], 0 }
   0x2   :  { %11 = vsyncpa [#allocation6], 0 }
   0x3   :  { %12 = vsyncpa [#allocation4], 0 }
   0x4   :  { %14 = vsyncpa [#allocation4 + $0x1], 0  ;;  %s643_s12 = smov 0   ;;  %s645_s13 = smov 0  }
   0x5   :  { %s647_s14 = smov 0   ;;  %s649_s15 = smov 0  }
   0x6 LB: > { %s664_s16 = sadd.s32 4294967295, %s614_s15   ;;  %s387_s17 = sadd.s32 4294967294, %s614_s15   ;;  %s614_s15 = sphi %s649_s15, %s835_s15   ;;  %s610_s14 = sphi %s647_s14, %s834_s14   ;;  %s606_s13 = sphi %s645_s13, %s833_s13   ;;  %s602_s12 = sphi %s643_s12, %s832_s12  }
   0x7   : > { %p40_p0 = scmp.ne.s32.totalorder %s606_s13, %s602_s12  ;;  %p814_p1 = scmp.eq.s32.totalorder %s664_s16, 0 }
   0x8   : > { %p112_p3 = scmp.eq.s32.totalorder %s387_s17, 1  ;;  %p388_p5 = scmp.ge.s32.totalorder %s614_s15, 1 }
   0x9   : > { %p673_p4 = por %p814_p1, %p40_p0  ;;  %p119_p7 = scmp.lt.s32.totalorder %s614_s15, 3 }
   0xa   : > { %p678_p6 = por %p112_p3, %p40_p0  ;;  %s616_s21 = smov [#allocation5]  }
   0xb   : > { %s818_s18 = scalar_select %p673_p4, 1, 0 }
   0xc   : > { %s819_s19 = scalar_select %p678_p6, 1, 0 }
   0xd   : > { %p683_p8 = pnand %p388_p5, %p119_p7  ;;  %s131_s22 = sshll.u32 %s616_s21, 4  ;;  %s132_s22 = int_to_ptr.vmem [resolvable:$true] %s131_s22 }
   0xe   : > { %s697_s24 = sadd.s32 1, %s614_s15   ;;  %s27_s25 = sadd.s32 1, %s610_s14 }
   0xf   : > { %s820_s20 = scalar_select %p683_p8, 1, 0 }
  0x10   : > { %p439_p9 = pneg %p683_p8  ;;  %s24_s26 = ssub.s32 %s614_s15, %s697_s24 }
  0x11   : > { %s503_s27 = scalar_lea.vmem %s132_s22, 1024  ;;  %p511_p5 = scmp.lt.s32.totalorder %s132_s22, %s132_s22 }
  0x12   : > { %p692_p11 = pnand %p439_p9, %p814_p1  ;;  %p504_p13 = scmp.ne.s32.totalorder %s132_s22, %s503_s27 }
  0x13   : > { %p512_p7 = scmp.lt.s32.totalorder %s503_s27, %s503_s27 }
  0x14   : > { %p494_p12 = pneg %p692_p11 }
  0x15   : > { %p513_p10 = por %p512_p7, %p511_p5 }
  0x16   : > { %p506_p0 = pnand %p504_p13, %p494_p12 }
  0x18   : > { %p507_p3 = pneg %p506_p0 }
  0x1a   : > { %p514_p2 = pnand %p513_p10, %p507_p3 }
  0x1c   : > { %517 = shalt.err (!%p514_p2)
}
  0x1d   : > { %s617_s28 = smov 128   ;;  %s618_s29 = smov 8  }
  0x1e   : > { %442 = dma.hbm_to_vmem [thread:$0]  (!%p692_p11), %s811_s1, 1024, %s132_s22, [#allocation6], %s617_s28, %s617_s28, %s618_s29  }
  0x1f   : > { %p25_p9 = scmp.eq.s32.totalorder %s24_s26, 0  ;;  %p34_p12 = scmp.ne.s32.totalorder %s610_s14, %s606_s13 }
  0x20   : > { %p35_p10 = scmp.eq.s32.totalorder %s614_s15, 0  ;;  %p452_p2 = scmp.lt.s32.totalorder %s614_s15, 2 }
  0x21   : > { %s714_s5 = scalar_select %p25_p9, %s610_s14, %s27_s25  }
  0x22   : > { %p36_p13 = por %p35_p10, %p34_p12  ;;  %p822_p0 = scmp.eq.s32.totalorder %s664_s16, 1 }
  0x23   : > { %s148_s7 = sand.u32 1, %s610_s14   ;;  %s392_s8 = sshll.u32 %s614_s15, 7 }
  0x24   : > { %p718_p3 = por %p822_p0, %p34_p12  ;;  %s391_s9 = sshll.u32 %s148_s7, 3 }
  0x25   : > { %s727_s17 = scalar_lea.hbm %s810_s0, %s392_s8  ;;  %s152_s21 = scalar_lea.vmem [#allocation2], %s391_s9 }
  0x26   : > { %s823_s6 = scalar_select %p718_p3, 1, 0 }
  0x27   : > { %s159_s22 = sshll.u32 %s152_s21, 4  ;;  %p729_p11 = pnand %p452_p2, %p36_p13  ;;  %s160_s22 = int_to_ptr.vmem [resolvable:$true] %s159_s22 }
  0x28   : > { %s149_s25 = scalar_lea.sflag [#allocation3], %s148_s7  ;;  %s518_s26 = scalar_lea.hbm %s727_s17, 128 }
  0x29   : > { %p519_p5 = scmp.ne.s32.totalorder %s727_s17, %s518_s26  ;;  %p520_p7 = pneg %p729_p11 }
  0x2a   : > { %s523_s29 = scalar_lea.hbm %s810_s0, 256  ;;  %p524_p10 = scmp.lt.s32.totalorder %s727_s17, %s810_s0 }
  0x2b   : > { %p521_p9 = pnand %p520_p7, %p519_p5  ;;  %p525_p2 = scmp.lt.s32.totalorder %s523_s29, %s518_s26 }
  0x2d   : > { %p522_p12 = pneg %p521_p9  ;;  %p526_p13 = por %p525_p2, %p524_p10 }
  0x2f   : > { %p527_p0 = pnand %p526_p13, %p522_p12 }
  0x31   : > { %530 = shalt.err (!%p527_p0)
}
  0x32   : > { %s531_s8 = scalar_lea.vmem %s160_s22, 128  ;;  %s619_s7 = smov [#allocation2]  }
  0x33   : > { %p532_p1 = scmp.ne.s32.totalorder %s160_s22, %s531_s8  ;;  %s536_s9 = sshll.u32 %s619_s7, 4  ;;  %s537_s9 = int_to_ptr.vmem [resolvable:$false] %s536_s9 }
  0x34   : > { %s538_s10 = scalar_lea.vmem %s537_s9, 256  ;;  %p539_p5 = scmp.lt.s32.totalorder %s160_s22, %s537_s9 }
  0x35   : > { %p534_p6 = pnand %p532_p1, %p520_p7  ;;  %p540_p9 = scmp.lt.s32.totalorder %s538_s10, %s531_s8 }
  0x37   : > { %p535_p3 = pneg %p534_p6  ;;  %p541_p4 = por %p540_p9, %p539_p5 }
  0x39   : > { %p542_p8 = pnand %p541_p4, %p535_p3 }
  0x3b   : > { %545 = shalt.err (!%p542_p8)
}
  0x3c   : > { %446 = dma.hbm_to_vmem [thread:$0]  (!%p729_p11), %s727_s17, 128, %s160_s22, %s149_s25  }
  0x3d   : > { %p825_p12 = scmp.ne.s32.totalorder %s820_s20, 0 }
  0x3e   : > { %s750_s11 = sand.u32 (!%p825_p12), 1, %s606_s13   ;;  %p826_p1 = scmp.ne.s32.totalorder (!%p825_p12), %s818_s18, 0 }
  0x3f   : > { %168 = sbr.rel (%p825_p12) target bundleno = 297 (0x129), region = 32  ;;  %s394_s21 = sshll.u32 (!%p825_p12), %s750_s11, 3 }
  0x40   : > { %s171_s26 = scalar_lea.sflag (!%p825_p12), [#allocation3], %s750_s11  ;;  %s174_s27 = scalar_lea.vmem (!%p825_p12), [#allocation2], %s394_s21 }
  0x44   : > { %589 = dma.done.wait (%p826_p1), %s171_s26, 128  }
  0x45   : > { %591 = vsyncadd (%p826_p1), %s171_s26, 4294967168  ;;  %p827_p4 = scmp.eq.s32.totalorder %s664_s16, 0 }
  0x47   : > { %593 = dma.done.wait (%p827_p4), [#allocation6], 1024   ;;  %p828_p6 = pmov %p827_p4 }
  0x48   : > { %v620_v0 = vmov 0.0   ;;  %vm621_vm0 = vmmov 0   ;;  %v210_v1 = vld [vmem:[#allocation5 + $0x38] sm:$0xff]  ;;  %v209_v2 = vld [vmem:[#allocation5 + $0x30] sm:$0xff]  ;;  %v208_v3 = vld [vmem:[#allocation5 + $0x28] sm:$0xff]  ;;  %vm218_vm1 = vcmask 523264  }
  0x49   : > { %595 = vsyncadd (%p828_p6), [#allocation6], 4294966272  ;;  %412 = vmatprep.subr.mxu0 %v620_v0  ;;  %428 = vmatprep.mubr.msk.f32.mxu0 %vm621_vm0, %v620_v0  ;;  %v207_v4 = vld [vmem:[#allocation5 + $0x20] sm:$0xff]  ;;  %v206_v5 = vld [vmem:[#allocation5 + $0x18] sm:$0xff]  ;;  %s400_s17 = sshll.u32 %s664_s16, 7  ;;  %s200_s22 = scalar_lea.vmem [#allocation7], %s394_s21 }
  0x4a   : > { %413 = vmatpush3.msra.mxu0 %v210_v1  ;;  %v205_v6 = vld [vmem:[#allocation5 + $0x10] sm:$0xff]  ;;  %v204_v8 = vld [vmem:[#allocation5 + $0x8] sm:$0xff]  ;;  %v203_v9 = vld [vmem:[#allocation5] sm:$0xff]  ;;  %s307_s23 = sshll.u32 %s200_s22, 4  ;;  %s773_s29 = scalar_lea.hbm %s813_s3, %s400_s17  ;;  %s308_s23 = int_to_ptr.vmem [resolvable:$true] %s307_s23 }
  0x4b   : > { %414 = vmatprep.subr.mxu0 %v620_v0  ;;  %v201_v7 = vld [vmem:[%s174_s27] sm:$0xff]  ;;  %s294_s30 = scalar_lea.sflag [#allocation4], %s750_s11  ;;  %s546_s4 = scalar_lea.vmem %s308_s23, 128 }
  0x4c   : > { %415 = vmatpush3.msra.mxu0 %v209_v2  ;;  %v202_v10 = vmax.f32 %v201_v7, 0.0  ;;  %v397_v11 = vld [vmem:[%s812_s2] ss:$0 sm:$0xff]  ;;  %p547_p8 = scmp.ne.s32.totalorder %s308_s23, %s546_s4  ;;  %p829_p3 = scmp.ne.s32.totalorder %s823_s6, 0 }
  0x4d   : > { %416 = vmatprep.subr.mxu0 %v620_v0  ;;  %s622_s16 = smov [#allocation7]  }
  0x4e   : > { %417 = vmatpush3.msra.mxu0 %v208_v3  ;;  %p548_p11 = pnand %p547_p8, %p829_p3  ;;  %s550_s8 = sshll.u32 %s622_s16, 4  ;;  %s551_s8 = int_to_ptr.vmem [resolvable:$false] %s550_s8 }
  0x4f   : > { %418 = vmatprep.subr.mxu0 %v620_v0  ;;  %s552_s7 = scalar_lea.vmem %s551_s8, 256  ;;  %p553_p10 = scmp.lt.s32.totalorder %s308_s23, %s551_s8 }
  0x50   : > { %419 = vmatpush3.msra.mxu0 %v207_v4  ;;  %p549_p7 = pneg %p548_p11  ;;  %p554_p2 = scmp.lt.s32.totalorder %s552_s7, %s546_s4 }
  0x51   : > { %420 = vmatprep.subr.mxu0 %v620_v0 }
  0x52   : > { %421 = vmatpush3.msra.mxu0 %v206_v5  ;;  %p555_p13 = por %p554_p2, %p553_p10 }
  0x53   : > { %422 = vmatprep.subr.mxu0 %v620_v0 }
  0x54   : > { %423 = vmatpush3.msra.mxu0 %v205_v6  ;;  %p556_p0 = pnand %p555_p13, %p549_p7 }
  0x55   : > { %424 = vmatprep.subr.mxu0 %v620_v0 }
  0x56   : > { %425 = vmatpush3.msra.mxu0 %v204_v8 }
  0x57   : > { %426 = vmatprep.subr.mxu0 %v620_v0 }
  0x58   : > { %427 = vmatpush3.msra.mxu0 %v203_v9 }
  0x59   : > { %429 = vmatmul.mubr.msk.f32.vlgmr.msra.gmra.mxu0 %vm218_vm1, %v202_v10 }
 0x119   : > { %v288_v12 = vpop.f32.mrf.mxu0 }
 0x11a   : > { %v289_v13 = vadd.f32 %v397_v11, %v288_v12 }
 0x11b   : > { %v430_v14 = vpop.f32.mrf.mxu0 }
 0x11c   : > { %292 = vst [vmem:[%s200_s22] sm:$0xff] %v289_v13 }
 0x11d   : > { %559 = shalt.err (!%p556_p0)
}
 0x11e   : > { %s560_s9 = scalar_lea.hbm %s773_s29, 128  ;;  %s564_s21 = scalar_lea.hbm %s813_s3, 256 }
 0x11f   : > { %p561_p5 = scmp.ne.s32.totalorder %s773_s29, %s560_s9  ;;  %p565_p1 = scmp.lt.s32.totalorder %s773_s29, %s813_s3 }
 0x120   : > { %p566_p4 = scmp.lt.s32.totalorder %s564_s21, %s560_s9 }
 0x121   : > { %p562_p9 = pnand %p561_p5, %p829_p3 }
 0x122   : > { %p567_p6 = por %p566_p4, %p565_p1 }
 0x123   : > { %p563_p12 = pneg %p562_p9 }
 0x125   : > { %p568_p8 = pnand %p567_p6, %p563_p12 }
 0x127   : > { %571 = shalt.err (!%p568_p8)
}
 0x128   : > { %437 = dma.vmem_to_hbm [thread:$0]  (%p829_p3), %s308_s23, 128, %s773_s29, %s294_s30  }
 0x129 PF: > { %s319_s18 = sand.u32 1, %s602_s12   ;;  %p830_p11 = scmp.ne.s32.totalorder %s819_s19, 0 }
 0x12a   : > { %p831_p7 = scmp.ge.s32.totalorder %s614_s15, 2  ;;  %s320_s20 = scalar_lea.sflag [#allocation4], %s319_s18 }
 0x12c   : > { %p448_p10 = pnand %p831_p7, %p830_p11 }
 0x12e   : > { %p449_p2 = pneg %p448_p10 }
 0x130   : > { %597 = dma.done.wait (%p449_p2), %s320_s20, 128  }
 0x131   : > { %599 = vsyncadd (%p449_p2), %s320_s20, 4294967168  ;;  %p17_p13 = scmp.ge.s32.totalorder %s697_s24, 4   ;;  %s832_s12 = smov %s606_s13 }
 0x132   : > { %s833_s13 = smov %s610_s14  ;;  %s834_s14 = smov %s714_s5 }
 0x133   : > { %s835_s15 = smov %s697_s24  ;;  %19 = sbr.rel (!%p17_p13) target bundleno = 6 (0x6), region = 81 }
 0x138   :  { %325 = vsyncpa [#allocation3], 1 }
 0x139   :  { %327 = vsyncpa [#allocation3 + $0x1], 1 }
 0x13a   :  { %328 = vsyncpa [#allocation6], 1 }
 0x13b   :  { %329 = vsyncpa [#allocation4], 1 }
 0x13c   :  { %331 = vsyncpa [#allocation4 + $0x1], 1 }

</bundles_post_ra>
